<compile_context>
chip_gen: v6e
topology: v6e:2x2x1
jax: 0.10.0
libtpu: 0.0.40
codegen_flags: <defaults>
</compile_context>

<pallas_src>
import functools

import jax
import jax.numpy as jnp
from jax import lax
from jax.experimental import pallas as pl
from jax.experimental.pallas import tpu as pltpu

LANES = 128
CHUNK_ROWS = 512   # inner compute chunk: (512,128) f32 temporaries ~= 256 KiB
MASK_SUB = 32      # int8 native sublane tile (32,128)


def _round_up(x, m):
    return ((x + m - 1) // m) * m


def _silog_kernel(est_ref, gt_ref, mask_ref, d_ref, d2_ref, cnt_ref, *,
                  chunk_rows):
    """Accumulate sum(d), sum(d^2), count into (8,128) f32 output slabs."""
    pid = pl.program_id(0)

    @pl.when(pid == 0)
    def _init():
        d_ref[...] = jnp.zeros_like(d_ref)
        d2_ref[...] = jnp.zeros_like(d2_ref)
        cnt_ref[...] = jnp.zeros_like(cnt_ref)

    tile_rows = est_ref.shape[0]
    n_chunks = tile_rows // chunk_rows          # static

    def accumulate(est_blk, gt_blk, msk_blk):
        # msk_blk is int8 (chunk_rows, LANES); the wrapper zero-pads it to the
        # full grid extent, so garbage rows read past the est/gt array end are
        # never "valid" and never reach the accumulators.
        valid = msk_blk != 0
        est = est_blk.astype(jnp.float32)        # in-kernel upcast (VPU, free)
        gt = gt_blk.astype(jnp.float32)
        # Single EUP log per element; NaN/Inf produced in invalid/padded lanes
        # is discarded by the select *before* any accumulation.
        d = jnp.where(valid, jnp.log(est / gt), 0.0)
        sub = chunk_rows // 8
        # Pure VPU vreg-tree adds into the resident (8,128) accumulators.
        d_ref[...] += jnp.sum(d.reshape(sub, 8, LANES), axis=0)
        d2_ref[...] += jnp.sum((d * d).reshape(sub, 8, LANES), axis=0)
        cnt_ref[...] += jnp.sum(
            valid.astype(jnp.float32).reshape(sub, 8, LANES), axis=0)

    if n_chunks == 1:
        accumulate(est_ref[...], gt_ref[...],
                   mask_ref[...].reshape(chunk_rows, LANES))
    else:
        mrows = chunk_rows // MASK_SUB

        def body(c, carry):
            r0 = pl.multiple_of(c * chunk_rows, chunk_rows)   # 32/512-aligned
            m0 = pl.multiple_of(c * mrows, mrows)
            accumulate(
                est_ref[pl.ds(r0, chunk_rows), :],
                gt_ref[pl.ds(r0, chunk_rows), :],
                mask_ref[pl.ds(m0, mrows)].reshape(chunk_rows, LANES))
            return carry

        lax.fori_loop(0, n_chunks, body, 0)


def silog_loss_pallas(depth_est, depth_gt, mask, variance_focus):
    """depth_est/depth_gt: float arrays (any shape, native dtype); mask: bool."""
    est_f = depth_est.reshape(-1)        # native dtype (bf16 stays 2 B/elem)
    gt_f = depth_gt.reshape(-1)
    n = est_f.shape[0]

    rows = pl.cdiv(n, LANES)
    itemsize = max(jnp.dtype(est_f.dtype).itemsize,
                   jnp.dtype(gt_f.dtype).itemsize)
    # Biggest tile whose double-buffered inputs stay under v5e's 16 MiB default
    # scoped-VMEM limit (v6e: 32/128 MiB, v7x: 32/64 MiB have more headroom).
    if itemsize <= 2:
        max_tile_rows = 8192       # 2*(8192*128*2)+8192*128 dbl-buf ~= 10.5 MiB
    elif itemsize <= 4:
        max_tile_rows = 4096       # ~= 9.4 MiB
    else:
        max_tile_rows = 2048

    if rows <= CHUNK_ROWS:
        tile_rows = _round_up(rows, MASK_SUB)
        chunk_rows = tile_rows
    else:
        tile_rows = min(max_tile_rows, _round_up(rows, CHUNK_ROWS))
        chunk_rows = CHUNK_ROWS

    grid_steps = pl.cdiv(rows, tile_rows)
    rows_padded = grid_steps * tile_rows

    # int8 mask, zero-padded out to the full grid extent.  This fuses with the
    # bool->int8 convert in XLA (~1 B/elem total), and the zero rows make the
    # garbage that partial est/gt tail blocks read past the array end
    # irrelevant -- no per-element row-iota check needed in the hot path.
    m_i8 = jnp.pad(mask.reshape(-1).astype(jnp.int8),
                   (0, rows_padded * LANES - n))
    m3 = m_i8.reshape(rows_padded // MASK_SUB, MASK_SUB, LANES)

    # est/gt only need lane alignment for the (rows,128) reshape; typical depth
    # maps (H*W multiple of 128) skip this copy entirely.
    lane_pad = rows * LANES - n
    if lane_pad:
        est_f = jnp.pad(est_f, (0, lane_pad))   # pad values masked out anyway
        gt_f = jnp.pad(gt_f, (0, lane_pad))
    est2 = est_f.reshape(rows, LANES)
    gt2 = gt_f.reshape(rows, LANES)

    acc_shape = jax.ShapeDtypeStruct((8, LANES), jnp.float32)
    acc_spec = pl.BlockSpec((8, LANES), lambda i: (0, 0))

    d_sum, d2_sum, cnt = pl.pallas_call(
        functools.partial(_silog_kernel, chunk_rows=chunk_rows),
        out_shape=(acc_shape, acc_shape, acc_shape),
        grid_spec=pltpu.PrefetchScalarGridSpec(
            num_scalar_prefetch=0,
            grid=(grid_steps,),
            in_specs=[
                pl.BlockSpec((tile_rows, LANES), lambda i: (i, 0)),
                pl.BlockSpec((tile_rows, LANES), lambda i: (i, 0)),
                pl.BlockSpec((tile_rows // MASK_SUB, MASK_SUB, LANES),
                             lambda i: (i, 0, 0)),
            ],
            out_specs=(acc_spec, acc_spec, acc_spec),
        ),
        compiler_params=pltpu.CompilerParams(
            dimension_semantics=("arbitrary",),
        ),
        cost_estimate=pl.CostEstimate(
            flops=8 * n,
            transcendentals=n,
            bytes_accessed=int(n * (2 * itemsize + 1) + 3 * 8 * LANES * 4)),
    )(est2, gt2, m3)

    # Final cross-lane reductions + scalar math on three tiny (8,128) slabs.
    c = jnp.sum(cnt)
    mean_d = jnp.sum(d_sum) / c
    mean_d2 = jnp.sum(d2_sum) / c
    var = mean_d2 - variance_focus * mean_d * mean_d
    # Guard a rounding-induced tiny negative (reference would NaN there).
    return jnp.sqrt(jnp.maximum(var, 0.0)) * 10.0


def silog_loss_ref(depth_est, depth_gt, mask, variance_focus):
    m = mask.reshape(-1)
    est = depth_est.reshape(-1).astype(jnp.float32)
    gt = depth_gt.reshape(-1).astype(jnp.float32)
    d = jnp.where(m, jnp.log(jnp.where(m, est, 1.0))
                  - jnp.log(jnp.where(m, gt, 1.0)), 0.0)
    c = jnp.sum(m.astype(jnp.float32))
    mean_d = jnp.sum(d) / c
    mean_d2 = jnp.sum(d * d) / c
    return jnp.sqrt(mean_d2 - variance_focus * mean_d ** 2) * 10.0


if __name__ == "__main__":
    key = jax.random.PRNGKey(0)
    variance_focus = 0.85
    k1, k2, k3, k4, k5, k6 = jax.random.split(key, 6)

    # Small NCHW depth maps (primary test).
    B, C, H, W = 2, 1, 32, 32
    depth_est = jax.random.uniform(k1, (B, C, H, W), jnp.float32, 0.5, 5.0)
    depth_gt = jax.random.uniform(k2, (B, C, H, W), jnp.float32, 0.5, 5.0)
    mask = jax.random.uniform(k3, (B, C, H, W), jnp.float32) > 0.3

    loss = jax.block_until_ready(
        silog_loss_pallas(depth_est, depth_gt, mask, variance_focus))
    ref = silog_loss_ref(depth_est, depth_gt, mask, variance_focus)
    assert jnp.isfinite(loss), f"non-finite loss: {loss}"
    assert jnp.abs(loss - ref) < 2e-3, f"mismatch: pallas={loss} ref={ref}"

    # Larger case: exercises multi-chunk inner loop + partial (garbage) tail block.
    B2, H2, W2 = 2, 240, 320
    est_l = jax.random.uniform(k4, (B2, 1, H2, W2), jnp.float32, 0.5, 5.0)
    gt_l = jax.random.uniform(k5, (B2, 1, H2, W2), jnp.float32, 0.5, 5.0)
    mk_l = jax.random.uniform(k6, (B2, 1, H2, W2), jnp.float32) > 0.3

    loss2 = jax.block_until_ready(
        silog_loss_pallas(est_l, gt_l, mk_l, variance_focus))
    ref2 = silog_loss_ref(est_l, gt_l, mk_l, variance_focus)
    assert jnp.isfinite(loss2), f"non-finite loss: {loss2}"
    assert jnp.abs(loss2 - ref2) < 2e-3, f"mismatch: pallas={loss2} ref={ref2}"

    # bf16 inputs stream natively (2 B/elem) and are upcast in-kernel.
    est_b = est_l.astype(jnp.bfloat16)
    gt_b = gt_l.astype(jnp.bfloat16)
    loss3 = jax.block_until_ready(
        silog_loss_pallas(est_b, gt_b, mk_l, variance_focus))
    ref3 = silog_loss_ref(est_b.astype(jnp.float32),
                          gt_b.astype(jnp.float32), mk_l, variance_focus)
    assert jnp.isfinite(loss3), f"non-finite loss: {loss3}"
    assert jnp.abs(loss3 - ref3) < 2e-3, f"mismatch: pallas={loss3} ref={ref3}"

    print("KERNEL_OK")
</pallas_src>

<mosaic_0001>
module attributes {stable_mosaic.version = 11 : i64} {
  func.func @_silog_kernel(%arg0: i32, %arg1: memref<32x128xf32, #tpu.memory_space<vmem>>, %arg2: memref<32x128xf32, #tpu.memory_space<vmem>>, %arg3: memref<1x32x128xi8, #tpu.memory_space<vmem>>, %arg4: memref<8x128xf32, #tpu.memory_space<vmem>>, %arg5: memref<8x128xf32, #tpu.memory_space<vmem>>, %arg6: memref<8x128xf32, #tpu.memory_space<vmem>>) attributes {dimension_semantics = [#tpu.dimension_semantics<arbitrary>], iteration_bounds = array<i64: 1>, scalar_prefetch = 0 : i64, scratch_operands = 0 : i64, tpu.core_type = #tpu.core_type<tc>, window_params = [{transform_indices = @transform_0, window_bounds = array<i64: 32, 128>}, {transform_indices = @transform_1, window_bounds = array<i64: 32, 128>}, {transform_indices = @transform_2, window_bounds = array<i64: 1, 32, 128>}, {pipeline_mode = #tpu.pipeline_mode<synchronous>, transform_indices = @transform_3, window_bounds = array<i64: 8, 128>}, {pipeline_mode = #tpu.pipeline_mode<synchronous>, transform_indices = @transform_4, window_bounds = array<i64: 8, 128>}, {pipeline_mode = #tpu.pipeline_mode<synchronous>, transform_indices = @transform_5, window_bounds = array<i64: 8, 128>}]} {
    %c0_i32 = arith.constant 0 : i32
    %0 = arith.cmpi eq, %arg0, %c0_i32 : i32
    %1 = arith.extui %0 : i1 to i32
    %c0_i32_0 = arith.constant 0 : i32
    %2 = arith.cmpi ne, %1, %c0_i32_0 : i32
    scf.if %2 {
      %cst_22 = arith.constant 0.000000e+00 : f32
      %31 = vector.broadcast %cst_22 : f32 to vector<8x128xf32>
      %c0_23 = arith.constant 0 : index
      %c0_24 = arith.constant 0 : index
      %32 = vector.load %arg4[%c0_23, %c0_24] : memref<8x128xf32, #tpu.memory_space<vmem>>, vector<8x128xf32>
      tpu.vector_store %arg4[%c0_23, %c0_24], %31 {strides = array<i32>} : memref<8x128xf32, #tpu.memory_space<vmem>>, vector<8x128xf32>,
      %cst_25 = arith.constant 0.000000e+00 : f32
      %33 = vector.broadcast %cst_25 : f32 to vector<8x128xf32>
      %c0_26 = arith.constant 0 : index
      %c0_27 = arith.constant 0 : index
      %34 = vector.load %arg5[%c0_26, %c0_27] : memref<8x128xf32, #tpu.memory_space<vmem>>, vector<8x128xf32>
      tpu.vector_store %arg5[%c0_26, %c0_27], %33 {strides = array<i32>} : memref<8x128xf32, #tpu.memory_space<vmem>>, vector<8x128xf32>,
      %cst_28 = arith.constant 0.000000e+00 : f32
      %35 = vector.broadcast %cst_28 : f32 to vector<8x128xf32>
      %c0_29 = arith.constant 0 : index
      %c0_30 = arith.constant 0 : index
      %36 = vector.load %arg6[%c0_29, %c0_30] : memref<8x128xf32, #tpu.memory_space<vmem>>, vector<8x128xf32>
      tpu.vector_store %arg6[%c0_29, %c0_30], %35 {strides = array<i32>} : memref<8x128xf32, #tpu.memory_space<vmem>>, vector<8x128xf32>,
    } else {
    }
    %c0 = arith.constant 0 : index
    %c0_1 = arith.constant 0 : index
    %3 = vector.load %arg1[%c0, %c0_1] : memref<32x128xf32, #tpu.memory_space<vmem>>, vector<32x128xf32>
    %c0_2 = arith.constant 0 : index
    %c0_3 = arith.constant 0 : index
    %4 = vector.load %arg2[%c0_2, %c0_3] : memref<32x128xf32, #tpu.memory_space<vmem>>, vector<32x128xf32>
    %c0_4 = arith.constant 0 : index
    %c0_5 = arith.constant 0 : index
    %c0_6 = arith.constant 0 : index
    %5 = vector.load %arg3[%c0_4, %c0_5, %c0_6] : memref<1x32x128xi8, #tpu.memory_space<vmem>>, vector<1x32x128xi8>
    %6 = vector.shape_cast %5 : vector<1x32x128xi8> to vector<32x128xi8>
    %c0_i8 = arith.constant 0 : i8
    %7 = vector.broadcast %c0_i8 : i8 to vector<32x128xi8>
    %8 = arith.cmpi ne, %6, %7 : vector<32x128xi8>
    %9 = arith.divf %3, %4 : vector<32x128xf32>
    %10 = math.log %9 : vector<32x128xf32>
    %cst = arith.constant 0.000000e+00 : f32
    %11 = vector.broadcast %cst : f32 to vector<32x128xf32>
    %12 = arith.select %8, %10, %11 : vector<32x128xi1>, vector<32x128xf32>
    %c0_7 = arith.constant 0 : index
    %c0_8 = arith.constant 0 : index
    %13 = vector.load %arg4[%c0_7, %c0_8] : memref<8x128xf32, #tpu.memory_space<vmem>>, vector<8x128xf32>
    %14 = vector.shape_cast %12 : vector<32x128xf32> to vector<4x8x128xf32>
    %cst_9 = arith.constant dense<0.000000e+00> : vector<8x128xf32>
    %15 = vector.multi_reduction <add>, %14, %cst_9 [0] : vector<4x8x128xf32> to vector<8x128xf32>
    %16 = arith.addf %13, %15 : vector<8x128xf32>
    %c0_10 = arith.constant 0 : index
    %c0_11 = arith.constant 0 : index
    %17 = vector.load %arg4[%c0_10, %c0_11] : memref<8x128xf32, #tpu.memory_space<vmem>>, vector<8x128xf32>
    tpu.vector_store %arg4[%c0_10, %c0_11], %16 {strides = array<i32>} : memref<8x128xf32, #tpu.memory_space<vmem>>, vector<8x128xf32>,
    %c0_12 = arith.constant 0 : index
    %c0_13 = arith.constant 0 : index
    %18 = vector.load %arg5[%c0_12, %c0_13] : memref<8x128xf32, #tpu.memory_space<vmem>>, vector<8x128xf32>
    %19 = arith.mulf %12, %12 : vector<32x128xf32>
    %20 = vector.shape_cast %19 : vector<32x128xf32> to vector<4x8x128xf32>
    %cst_14 = arith.constant dense<0.000000e+00> : vector<8x128xf32>
    %21 = vector.multi_reduction <add>, %20, %cst_14 [0] : vector<4x8x128xf32> to vector<8x128xf32>
    %22 = arith.addf %18, %21 : vector<8x128xf32>
    %c0_15 = arith.constant 0 : index
    %c0_16 = arith.constant 0 : index
    %23 = vector.load %arg5[%c0_15, %c0_16] : memref<8x128xf32, #tpu.memory_space<vmem>>, vector<8x128xf32>
    tpu.vector_store %arg5[%c0_15, %c0_16], %22 {strides = array<i32>} : memref<8x128xf32, #tpu.memory_space<vmem>>, vector<8x128xf32>,
    %c0_17 = arith.constant 0 : index
    %c0_18 = arith.constant 0 : index
    %24 = vector.load %arg6[%c0_17, %c0_18] : memref<8x128xf32, #tpu.memory_space<vmem>>, vector<8x128xf32>
    %25 = arith.extui %8 : vector<32x128xi1> to vector<32x128xi32>
    %26 = arith.sitofp %25 : vector<32x128xi32> to vector<32x128xf32>
    %27 = vector.shape_cast %26 : vector<32x128xf32> to vector<4x8x128xf32>
    %cst_19 = arith.constant dense<0.000000e+00> : vector<8x128xf32>
    %28 = vector.multi_reduction <add>, %27, %cst_19 [0] : vector<4x8x128xf32> to vector<8x128xf32>
    %29 = arith.addf %24, %28 : vector<8x128xf32>
    %c0_20 = arith.constant 0 : index
    %c0_21 = arith.constant 0 : index
    %30 = vector.load %arg6[%c0_20, %c0_21] : memref<8x128xf32, #tpu.memory_space<vmem>>, vector<8x128xf32>
    tpu.vector_store %arg6[%c0_20, %c0_21], %29 {strides = array<i32>} : memref<8x128xf32, #tpu.memory_space<vmem>>, vector<8x128xf32>,
    return
  }
  func.func @transform_0(%arg0: i32) -> (i32, i32) {
    %c0_i32 = arith.constant 0 : i32
    %c0_i32_0 = arith.constant 0 : i32
    return %arg0, %c0_i32 : i32, i32
  }
  func.func @transform_1(%arg0: i32) -> (i32, i32) {
    %c0_i32 = arith.constant 0 : i32
    %c0_i32_0 = arith.constant 0 : i32
    return %arg0, %c0_i32 : i32, i32
  }
  func.func @transform_2(%arg0: i32) -> (i32, i32, i32) {
    %c0_i32 = arith.constant 0 : i32
    %c0_i32_0 = arith.constant 0 : i32
    %c0_i32_1 = arith.constant 0 : i32
    return %arg0, %c0_i32, %c0_i32_0 : i32, i32, i32
  }
  func.func @transform_3(%arg0: i32) -> (i32, i32) {
    %c0_i32 = arith.constant 0 : i32
    %c0_i32_0 = arith.constant 0 : i32
    %c0_i32_1 = arith.constant 0 : i32
    return %c0_i32, %c0_i32_0 : i32, i32
  }
  func.func @transform_4(%arg0: i32) -> (i32, i32) {
    %c0_i32 = arith.constant 0 : i32
    %c0_i32_0 = arith.constant 0 : i32
    %c0_i32_1 = arith.constant 0 : i32
    return %c0_i32, %c0_i32_0 : i32, i32
  }
  func.func @transform_5(%arg0: i32) -> (i32, i32) {
    %c0_i32 = arith.constant 0 : i32
    %c0_i32_0 = arith.constant 0 : i32
    %c0_i32_1 = arith.constant 0 : i32
    return %c0_i32, %c0_i32_0 : i32, i32
  }
}

</mosaic_0001>

<bundles_post_ra>
// kernel: tpu_custom_call.1
= control target key start
LH: loop header
LB: loop body
LE: loop exit
PB: predicated region body
PF: predicated region fallthrough
CT: control target
= control target key end

     0   :  { %11 = vsyncpa [#allocation3], 0  ;;  %s447_s0 = inlined_call_operand.hbm [shape: f32[16,128], index: 0, kind: input, shape index: {}]   ;;  %s448_s1 = inlined_call_operand.hbm [shape: f32[16,128], index: 1, kind: input, shape index: {}]   ;;  %s449_s2 = inlined_call_operand.hbm [shape: s8[1,32,128], index: 2, kind: input, shape index: {}]   ;;  %s450_s3 = inlined_call_operand.hbm [shape: f32[8,128], index: 3, kind: output, shape index: {0}]   ;;  %s451_s4 = inlined_call_operand.hbm [shape: f32[8,128], index: 4, kind: output, shape index: {1}]   ;;  %s452_s5 = inlined_call_operand.hbm [shape: f32[8,128], index: 5, kind: output, shape index: {2}]  }
   0x1   :  { %12 = vsyncpa [#allocation6], 0 }
   0x2   :  { %13 = vsyncpa [#allocation4], 0 }
   0x3   :  { %14 = vsyncpa [#allocation10], 0 }
   0x4   :  { %19 = vsyncadd [#allocation3], 256  ;;  %s357_s18 = smov [#allocation2]  }
   0x5   :  { %s20_s19 = sshll.u32 %s357_s18, 4  ;;  %s21_s19 = int_to_ptr.vmem [resolvable:$true] %s20_s19 }
   0x6   :  { %s237_s20 = scalar_lea.vmem %s21_s19, 256  ;;  %s241_s21 = scalar_lea.vmem %s21_s19, 512 }
   0x7   :  { %p238_p0 = scmp.ne.s32.totalorder %s21_s19, %s237_s20  ;;  %p242_p1 = scmp.lt.s32.totalorder %s21_s19, %s21_s19 }
   0x8   :  { %p243_p2 = scmp.lt.s32.totalorder %s241_s21, %s237_s20 }
   0xa   :  { %p244_p3 = por %p243_p2, %p242_p1 }
   0xc   :  { %p245_p4 = pnand %p244_p3, %p238_p0 }
   0xe   :  { %248 = shalt.err (!%p245_p4)
}
   0xf   :  { %s358_s22 = smov 128   ;;  %s359_s23 = smov 8  }
  0x10   :  { %26 = dma.hbm_to_vmem [thread:$0]  %s447_s0, 256, %s21_s19, [#allocation3], %s358_s22, %s358_s22, %s359_s23  }
  0x11   :  { %31 = vsyncadd [#allocation6], 256  ;;  %s360_s26 = smov [#allocation5]   ;;  %s361_s28 = smov [#allocation7]  }
  0x12   :  { %s32_s27 = sshll.u32 %s360_s26, 4  ;;  %s45_s29 = sshll.u32 %s361_s28, 4  ;;  %s33_s27 = int_to_ptr.vmem [resolvable:$true] %s32_s27  ;;  %s46_s29 = int_to_ptr.vmem [resolvable:$true] %s45_s29 }
  0x13   :  { %s257_s30 = scalar_lea.vmem %s33_s27, 256  ;;  %s261_s6 = scalar_lea.vmem %s33_s27, 512 }
  0x14   :  { %p258_p5 = scmp.ne.s32.totalorder %s33_s27, %s257_s30  ;;  %p262_p6 = scmp.lt.s32.totalorder %s33_s27, %s33_s27 }
  0x15   :  { %p263_p7 = scmp.lt.s32.totalorder %s261_s6, %s257_s30 }
  0x17   :  { %p264_p8 = por %p263_p7, %p262_p6 }
  0x19   :  { %p265_p9 = pnand %p264_p8, %p258_p5 }
  0x1b   :  { %268 = shalt.err (!%p265_p9)
}
  0x1c   :  { %38 = dma.hbm_to_vmem [thread:$0]  %s448_s1, 256, %s33_s27, [#allocation6], %s358_s22, %s358_s22, %s359_s23  }
  0x1d   :  { %s277_s0 = scalar_lea.vmem %s46_s29, 128  ;;  %p282_p11 = scmp.lt.s32.totalorder %s46_s29, %s46_s29 }
  0x1e   :  { %p278_p10 = scmp.ne.s32.totalorder %s46_s29, %s277_s0  ;;  %p283_p12 = scmp.lt.s32.totalorder %s277_s0, %s277_s0 }
  0x20   :  { %p284_p13 = por %p283_p12, %p282_p11 }
  0x22   :  { %p285_p0 = pnand %p284_p13, %p278_p10 }
  0x24   :  { %288 = shalt.err (!%p285_p0)
}
  0x25   :  { %48 = dma.hbm_to_vmem [thread:$0]  %s449_s2, 128, %s46_s29, [#allocation6]  }
  0x26   :  { %349 = dma.done.wait [#allocation3], 512  }
  0x27   :  { %350 = vsyncadd [#allocation3], 4294966784 }
  0x28   :  { %351 = dma.done.wait [#allocation6], 640  }
  0x29   :  { %352 = vsyncadd [#allocation6], 4294966656  ;;  %v71_v0 = vld [vmem:[#allocation5] sm:$0xff]  ;;  %v72_v1 = vld [vmem:[#allocation5 + $0x8] sm:$0xff]  ;;  %v362_v5 = vmov 0   ;;  %v363_v37 = vmov 0.0  }
  0x2a   :  { %v73_v2 = vld [vmem:[#allocation5 + $0x10] sm:$0xff]  ;;  %v74_v3 = vld [vmem:[#allocation5 + $0x18] sm:$0xff]  ;;  %v75_v4 = vld [vmem:[#allocation7] sm:$0xff]  ;;  %213 = vrcp.f32 %v71_v0  ;;  %s364_s1 = smov [#allocation8]   ;;  %s365_s11 = smov [#allocation9]  }
  0x2b   :  { %vm76_vm0 = vnez %v75_v4  ;;  %215 = vrcp.f32 %v72_v1  ;;  %v67_v22 = vld [vmem:[#allocation2] sm:$0xff]  ;;  %v68_v27 = vld [vmem:[#allocation2 + $0x8] sm:$0xff]  ;;  %v69_v30 = vld [vmem:[#allocation2 + $0x10] sm:$0xff]  ;;  %s162_s2 = sshll.u32 %s364_s1, 4  ;;  %s172_s12 = sshll.u32 %s365_s11, 4  ;;  %s163_s2 = int_to_ptr.vmem [resolvable:$true] %s162_s2  ;;  %s173_s12 = int_to_ptr.vmem [resolvable:$true] %s172_s12 }
  0x2c   :  { %217 = vrcp.f32 %v73_v2  ;;  %v93_v6 = vsel %vm76_vm0, 16843009, %v362_v5  ;;  %v70_v34 = vld [vmem:[#allocation2 + $0x18] sm:$0xff]  ;;  %s366_s13 = smov [#allocation11]   ;;  %s289_s15 = scalar_lea.vmem %s163_s2, 128 }
  0x2d   :  { %219 = vrcp.f32 %v74_v3  ;;  %v94_v7 = vunpack.c.0.s8 %v93_v6  ;;  %v95_v8 = vunpack.c.1.s8 %v93_v6  ;;  %v96_v9 = vunpack.c.2.s8 %v93_v6  ;;  %s182_s14 = sshll.u32 %s366_s13, 4  ;;  %p290_p1 = scmp.ne.s32.totalorder %s163_s2, %s289_s15  ;;  %s183_s14 = int_to_ptr.vmem [resolvable:$true] %s182_s14 }
  0x2e   :  { %v97_v10 = vunpack.c.3.s8 %v93_v6  ;;  %p294_p2 = scmp.lt.s32.totalorder %s163_s2, %s163_s2  ;;  %p295_p3 = scmp.lt.s32.totalorder %s289_s15, %s289_s15 }
  0x2f   :  { %v98_v11 = vpack.c.b16 %v94_v7, %v94_v7  ;;  %v100_v12 = vpack.c.b16 %v95_v8, %v95_v8  ;;  %v102_v13 = vpack.c.b16 %v96_v9, %v96_v9 }
  0x30   :  { %v104_v14 = vpack.c.b16 %v97_v10, %v97_v10  ;;  %p296_p4 = por %p295_p3, %p294_p2 }
  0x31   :  { %v99_v15 = vpack.c.b8 %v98_v11, %v98_v11  ;;  %v101_v16 = vpack.c.b8 %v100_v12, %v100_v12  ;;  %v103_v17 = vpack.c.b8 %v102_v13, %v102_v13 }
  0x32   :  { %v105_v18 = vpack.c.b8 %v104_v14, %v104_v14  ;;  %p297_p5 = pnand %p296_p4, %p290_p1 }
  0x33   :  { %vm106_vm1 = vnez %v99_v15  ;;  %vm107_vm2 = vnez %v101_v16  ;;  %vm108_vm3 = vnez %v103_v17 }
  0x34   :  { %vm109_vm4 = vnez %v105_v18  ;;  %v110_v19 = vsel %vm106_vm1, 16843009, %v362_v5  ;;  %v111_v20 = vsel %vm107_vm2, 16843009, %v362_v5  ;;  %v112_v21 = vsel %vm108_vm3, 16843009, %v362_v5 }
  0x35   :  { %v113_v23 = vsel %vm109_vm4, 16843009, %v362_v5  ;;  %v114_v24 = vunpack.c.0.s8 %v110_v19  ;;  %v115_v25 = vunpack.c.0.s8 %v111_v20  ;;  %v116_v26 = vunpack.c.0.s8 %v112_v21 }
  0x36   :  { %v117_v28 = vunpack.c.0.s8 %v113_v23 }
  0x37   :  { %v214_v29 = vpop.eup %213  ;;  %vm406_vm5 = vcmp.ne.s32.totalorder %v114_v24, 0  ;;  %vm410_vm6 = vcmp.ne.s32.totalorder %v115_v25, 0  ;;  %vm414_vm7 = vcmp.ne.s32.totalorder %v116_v26, 0 }
  0x38   :  { %v216_v33 = vpop.eup %215  ;;  %v78_v35 = vmul.f32 %v214_v29, %v67_v22  ;;  %v199_v38 = vsel %vm406_vm5, 1.0, %v363_v37  ;;  %v200_v39 = vsel %vm410_vm6, 1.0, %v363_v37  ;;  %vm422_vm8 = vcmp.ne.s32.totalorder %v117_v28, 0 }
  0x39   :  { %v218_v40 = vpop.eup %217  ;;  %v80_v41 = vmul.f32 %v216_v33, %v68_v27  ;;  %v201_v43 = vsel %vm414_vm7, 1.0, %v363_v37  ;;  %v151_v44 = vadd.f32 %v200_v39, %v199_v38  ;;  %v202_v47 = vsel %vm422_vm8, 1.0, %v363_v37 }
  0x3a   :  { %v220_v45 = vpop.eup %219  ;;  %v82_v46 = vmul.f32 %v218_v40, %v69_v30  ;;  %221 = vlog2.f32 %v78_v35 }
  0x3b   :  { %v84_v48 = vmul.f32 %v220_v45, %v70_v34  ;;  %223 = vlog2.f32 %v80_v41  ;;  %v152_v49 = vadd.f32 %v201_v43, %v151_v44 }
  0x3c   :  { %225 = vlog2.f32 %v82_v46 }
  0x3d   :  { %227 = vlog2.f32 %v84_v48  ;;  %v153_v50 = vadd.f32 %v202_v47, %v152_v49 }
  0x3f   :  { %155 = vst [vmem:[#allocation11] sm:$0xff] %v153_v50 }
  0x47   :  { %v222_v51 = vpop.eup %221 }
  0x48   :  { %v224_v52 = vpop.eup %223  ;;  %v86_v53 = vmul.f32 0.6931472, %v222_v51 }
  0x49   :  { %v226_v54 = vpop.eup %225  ;;  %v88_v55 = vmul.f32 0.6931472, %v224_v52 }
  0x4a   :  { %v228_v56 = vpop.eup %227  ;;  %v90_v57 = vmul.f32 0.6931472, %v226_v54  ;;  %v122_v58 = vsel %vm406_vm5, %v86_v53, 0.0 }
  0x4b   :  { %v92_v59 = vmul.f32 0.6931472, %v228_v56  ;;  %v123_v60 = vsel %vm410_vm6, %v88_v55, 0.0  ;;  %v133_v61 = vmul.f32 %v122_v58, %v122_v58 }
  0x4c   :  { %v124_v62 = vsel %vm414_vm7, %v90_v57, 0.0  ;;  %v134_v63 = vmul.f32 %v123_v60, %v123_v60  ;;  %v127_v0 = vadd.f32 %v123_v60, %v122_v58 }
  0x4d   :  { %v125_v1 = vsel %vm422_vm8, %v92_v59, 0.0  ;;  %v135_v2 = vmul.f32 %v124_v62, %v124_v62 }
  0x4e   :  { %v136_v3 = vmul.f32 %v125_v1, %v125_v1  ;;  %v137_v4 = vadd.f32 %v134_v63, %v133_v61  ;;  %v128_v5 = vadd.f32 %v127_v0, %v124_v62 }
  0x50   :  { %v138_v6 = vadd.f32 %v137_v4, %v135_v2  ;;  %v129_v7 = vadd.f32 %v128_v5, %v125_v1 }
  0x52   :  { %v139_v8 = vadd.f32 %v138_v6, %v136_v3  ;;  %131 = vst [vmem:[#allocation8] sm:$0xff] %v129_v7 }
  0x53   :  { %300 = shalt.err (!%p297_p5)
}
  0x54   :  { %165 = dma.vmem_to_hbm [thread:$0]  %s163_s2, 128, %s450_s3, [#allocation4]   ;;  %141 = vst [vmem:[#allocation9] sm:$0xff] %v139_v8 }
  0x55   :  { %s309_s18 = scalar_lea.vmem %s173_s12, 128  ;;  %p314_p7 = scmp.lt.s32.totalorder %s173_s12, %s173_s12 }
  0x56   :  { %p310_p6 = scmp.ne.s32.totalorder %s173_s12, %s309_s18  ;;  %p315_p8 = scmp.lt.s32.totalorder %s309_s18, %s309_s18 }
  0x58   :  { %p316_p9 = por %p315_p8, %p314_p7 }
  0x5a   :  { %p317_p10 = pnand %p316_p9, %p310_p6 }
  0x5c   :  { %320 = shalt.err (!%p317_p10)
}
  0x5d   :  { %175 = dma.vmem_to_hbm [thread:$0]  %s173_s12, 128, %s451_s4, [#allocation10]  }
  0x5e   :  { %s329_s21 = scalar_lea.vmem %s183_s14, 128  ;;  %p334_p12 = scmp.lt.s32.totalorder %s183_s14, %s183_s14 }
  0x5f   :  { %p330_p11 = scmp.ne.s32.totalorder %s183_s14, %s329_s21  ;;  %p335_p13 = scmp.lt.s32.totalorder %s329_s21, %s329_s21 }
  0x61   :  { %p336_p0 = por %p335_p13, %p334_p12 }
  0x63   :  { %p337_p1 = pnand %p336_p0, %p330_p11 }
  0x65   :  { %340 = shalt.err (!%p337_p1)
}
  0x66   :  { %185 = dma.vmem_to_hbm [thread:$0]  %s183_s14, 128, %s452_s5, [#allocation10]  }
  0x67   :  { %353 = dma.done.wait [#allocation4], 128  }
  0x68   :  { %354 = vsyncadd [#allocation4], 4294967168 }
  0x69   :  { %355 = dma.done.wait [#allocation10], 256  }
  0x6a   :  { %356 = vsyncadd [#allocation10], 4294967040 }
  0x6b   :  { %195 = vsyncpa [#allocation3], 1 }
  0x6c   :  { %196 = vsyncpa [#allocation6], 1 }
  0x6d   :  { %197 = vsyncpa [#allocation4], 1 }
  0x6e   :  { %198 = vsyncpa [#allocation10], 1 }

</bundles_post_ra>
